<compile_context>
chip_gen: v5e
topology: v5e:2x2
jax: 0.10.0
libtpu: 0.0.40
codegen_flags: <defaults>
</compile_context>

<pallas_src>
import jax
import jax.numpy as jnp
from jax.experimental import pallas as pl
from jax.experimental.pallas import tpu as pltpu


def lstm_decoder_kernel(xg_ref,   # (T, 4H) x_t @ W_ih + (b_ih+b_hh), all steps
                        whh_ref,  # (H, 4H) fused recurrent weights (i,f,g,o)
                        h0_ref,   # (1, H)
                        c0_ref,   # (1, H)
                        out_ref,  # (T, H)  all hidden states
                        hn_ref,   # (1, H)
                        cn_ref):  # (1, H)
    num_steps = out_ref.shape[0]
    H = hn_ref.shape[-1]

    # Loop-invariant recurrent weights: load into vregs once (4 vregs at H=32).
    whh = whh_ref[...]

    def step(t, carry):
        h, c = carry                                   # (1, H) each, in vregs
        # Recurrent half of the gates; input half + bias was precomputed.
        gates = xg_ref[pl.ds(t, 1), :] + jnp.dot(
            h, whh, preferred_element_type=jnp.float32)            # (1, 4H)

        # Two full-width EUP pushes instead of four narrow per-gate ones.
        # sigmoid(x) = 0.5 * (tanh(x/2) + 1) keeps it on the EUP slot (exact).
        sig = 0.5 * jnp.tanh(0.5 * gates) + 0.5        # i/f/o lanes used
        tgh = jnp.tanh(gates)                          # g lanes used

        # Lane-align f/g/o with the (1, H) carries via XLU rolls (jnp.roll
        # semantics: roll by 4H-k brings lanes [k:k+H] to [0:H]).
        i_g = sig[:, 0:H]                                      # lanes [0 , H)
        f_g = pltpu.roll(sig, shift=3 * H, axis=1)[:, 0:H]     # lanes [H ,2H)
        g_g = pltpu.roll(tgh, shift=2 * H, axis=1)[:, 0:H]     # lanes [2H,3H)
        o_g = pltpu.roll(sig, shift=H, axis=1)[:, 0:H]         # lanes [3H,4H)

        c_new = f_g * c + i_g * g_g
        h_new = o_g * jnp.tanh(c_new)

        out_ref[pl.ds(t, 1), :] = h_new                # VMEM-resident block
        return (h_new, c_new)

    # Fully unroll short sequences; partial unroll (8) otherwise so the LLO
    # scheduler can overlap adjacent steps' xg loads / EUP pushes.
    unroll = num_steps if num_steps <= 16 else 8
    h_fin, c_fin = jax.lax.fori_loop(
        0, num_steps, step, (h0_ref[...], c0_ref[...]), unroll=unroll)

    hn_ref[...] = h_fin
    cn_ref[...] = c_fin


def prepare_decoder_params(emb, W_ih, W_hh, b_ih, b_hh):
    """One-time parameter prep (torch layout in, kernel layout out).

    Folds embedding lookup + input projection + both biases into one (V, 4H)
    table so the kernel only runs the serial recurrence.
    torch layout: emb (V,E), W_ih (4H,E), W_hh (4H,H), biases (4H,).
    """
    xg_table = (
        jnp.dot(emb, W_ih.T, precision=jax.lax.Precision.HIGHEST)
        + (b_ih + b_hh)[None, :]
    ).astype(jnp.float32)                                   # (V, 4H)
    return {
        "xg_table": xg_table,
        "w_hh": jnp.transpose(W_hh).astype(jnp.float32),    # (H, 4H)
    }


def decoder_rnn_forward(token_ids, enc_final_state, params):
    """Mirrors DecoderRnn.forward: returns (lstm_out, (h_n, c_n))."""
    xg_table = params["xg_table"]      # (V, 4H)
    w_hh = params["w_hh"]              # (H, 4H)
    h0, c0 = enc_final_state           # (1, 1, H) each

    T = token_ids.shape[0]
    H = w_hh.shape[0]

    # Per-token gather of the precomputed gate pre-activations: the only work
    # left outside the kernel (plain XLA gather, fully prefetchable).
    xg_all = xg_table[token_ids]       # (T, 4H)

    vmem = pl.BlockSpec(memory_space=pltpu.MemorySpace.VMEM)

    lstm_out, h_n, c_n = pl.pallas_call(
        lstm_decoder_kernel,
        out_shape=(
            jax.ShapeDtypeStruct((T, H), jnp.float32),
            jax.ShapeDtypeStruct((1, H), jnp.float32),
            jax.ShapeDtypeStruct((1, H), jnp.float32),
        ),
        in_specs=[vmem] * 4,
        out_specs=(vmem, vmem, vmem),
    )(xg_all, w_hh, h0.reshape(1, H), c0.reshape(1, H))

    return (lstm_out.reshape(T, 1, H),
            (h_n.reshape(1, 1, H), c_n.reshape(1, 1, H)))


def reference_forward(token_ids, enc_final_state, emb, W_ih, W_hh, b_ih, b_hh):
    """Pure-JAX reference matching torch.nn.LSTM (gate order i,f,g,o)."""
    h0, c0 = enc_final_state
    H = h0.shape[-1]
    x_seq = emb[token_ids]  # (T, E)

    def step(carry, x):
        h, c = carry
        gates = x @ W_ih.T + b_ih + h @ W_hh.T + b_hh
        i = jax.nn.sigmoid(gates[0:H])
        f = jax.nn.sigmoid(gates[H:2 * H])
        g = jnp.tanh(gates[2 * H:3 * H])
        o = jax.nn.sigmoid(gates[3 * H:4 * H])
        c = f * c + i * g
        h = o * jnp.tanh(c)
        return (h, c), h

    (hT, cT), hs = jax.lax.scan(step, (h0[0, 0], c0[0, 0]), x_seq)
    T = token_ids.shape[0]
    return hs.reshape(T, 1, H), (hT.reshape(1, 1, H), cT.reshape(1, 1, H))


if __name__ == "__main__":
    vocab_size, embedding_size, hidden_units, seq_len = 50, 32, 32, 8
    V, E, H, T = vocab_size, embedding_size, hidden_units, seq_len

    key = jax.random.PRNGKey(0)
    k_emb, k_wi, k_wh, k_bi, k_bh, k_tok, k_h0, k_c0 = jax.random.split(key, 8)

    scale = 1.0 / jnp.sqrt(jnp.float32(H))
    emb = jax.random.normal(k_emb, (V, E), dtype=jnp.float32)
    W_ih = jax.random.uniform(k_wi, (4 * H, E), jnp.float32, -scale, scale)
    W_hh = jax.random.uniform(k_wh, (4 * H, H), jnp.float32, -scale, scale)
    b_ih = jax.random.uniform(k_bi, (4 * H,), jnp.float32, -scale, scale)
    b_hh = jax.random.uniform(k_bh, (4 * H,), jnp.float32, -scale, scale)

    # Kernel-friendly parameter layout (precomputed once).
    params = prepare_decoder_params(emb, W_ih, W_hh, b_ih, b_hh)

    token_ids = jax.random.randint(k_tok, (T,), 0, V, dtype=jnp.int32)
    h0 = jax.random.normal(k_h0, (1, 1, H), dtype=jnp.float32)
    c0 = jax.random.normal(k_c0, (1, 1, H), dtype=jnp.float32)

    lstm_out, (h_n, c_n) = decoder_rnn_forward(token_ids, (h0, c0), params)
    jax.block_until_ready((lstm_out, h_n, c_n))

    ref_out, (ref_h, ref_c) = reference_forward(
        token_ids, (h0, c0), emb, W_ih, W_hh, b_ih, b_hh)

    assert lstm_out.shape == (T, 1, H)
    assert h_n.shape == (1, 1, H) and c_n.shape == (1, 1, H)
    assert jnp.allclose(lstm_out, ref_out, atol=1e-5, rtol=1e-5)
    assert jnp.allclose(h_n, ref_h, atol=1e-5, rtol=1e-5)
    assert jnp.allclose(c_n, ref_c, atol=1e-5, rtol=1e-5)

    print("KERNEL_OK")
</pallas_src>

<mosaic_0001>
module attributes {stable_mosaic.version = 11 : i64} {
  func.func @lstm_decoder_kernel(%arg0: memref<8x128xf32, #tpu.memory_space<vmem>>, %arg1: memref<32x128xf32, #tpu.memory_space<vmem>>, %arg2: memref<1x32xf32, #tpu.memory_space<vmem>>, %arg3: memref<1x32xf32, #tpu.memory_space<vmem>>, %arg4: memref<8x32xf32, #tpu.memory_space<vmem>>, %arg5: memref<1x32xf32, #tpu.memory_space<vmem>>, %arg6: memref<1x32xf32, #tpu.memory_space<vmem>>) attributes {dimension_semantics = [], scalar_prefetch = 0 : i64, scratch_operands = 0 : i64, tpu.core_type = #tpu.core_type<tc>} {
    %c0 = arith.constant 0 : index
    %c0_0 = arith.constant 0 : index
    %0 = vector.load %arg1[%c0, %c0_0] : memref<32x128xf32, #tpu.memory_space<vmem>>, vector<32x128xf32>
    %c0_1 = arith.constant 0 : index
    %c0_2 = arith.constant 0 : index
    %1 = vector.load %arg2[%c0_1, %c0_2] : memref<1x32xf32, #tpu.memory_space<vmem>>, vector<1x32xf32>
    %c0_3 = arith.constant 0 : index
    %c0_4 = arith.constant 0 : index
    %2 = vector.load %arg3[%c0_3, %c0_4] : memref<1x32xf32, #tpu.memory_space<vmem>>, vector<1x32xf32>
    %c0_i32 = arith.constant 0 : i32
    %3 = arith.index_cast %c0_i32 : i32 to index
    %c0_5 = arith.constant 0 : index
    %4 = vector.load %arg0[%3, %c0_5] : memref<8x128xf32, #tpu.memory_space<vmem>>, vector<1x128xf32>
    %cst = arith.constant dense<0.000000e+00> : vector<1x128xf32>
    %5 = tpu.matmul %1, %0, %cst {dimension_numbers = #tpu.dot_dimension_numbers<[1], [0], [0], [1], [0, 0, 1, 1], [], []>} : vector<1x32xf32>, vector<32x128xf32>, vector<1x128xf32> -> vector<1x128xf32>
    %6 = arith.addf %4, %5 : vector<1x128xf32>
    %cst_6 = arith.constant 5.000000e-01 : f32
    %7 = vector.broadcast %cst_6 : f32 to vector<1x128xf32>
    %8 = arith.mulf %7, %6 : vector<1x128xf32>
    %9 = math.tanh %8 : vector<1x128xf32>
    %cst_7 = arith.constant 5.000000e-01 : f32
    %10 = vector.broadcast %cst_7 : f32 to vector<1x128xf32>
    %11 = arith.mulf %10, %9 : vector<1x128xf32>
    %cst_8 = arith.constant 5.000000e-01 : f32
    %12 = vector.broadcast %cst_8 : f32 to vector<1x128xf32>
    %13 = arith.addf %11, %12 : vector<1x128xf32>
    %14 = math.tanh %6 : vector<1x128xf32>
    %15 = vector.extract_strided_slice %13 {offsets = [0, 0], sizes = [1, 32], strides = [1, 1]} : vector<1x128xf32> to vector<1x32xf32>
    %c96_i32 = arith.constant 96 : i32
    %16 = tpu.dynamic_rotate %13 by %c96_i32 dim 1 : vector<1x128xf32>, i32 -> vector<1x128xf32>
    %17 = vector.extract_strided_slice %16 {offsets = [0, 0], sizes = [1, 32], strides = [1, 1]} : vector<1x128xf32> to vector<1x32xf32>
    %c64_i32 = arith.constant 64 : i32
    %18 = tpu.dynamic_rotate %14 by %c64_i32 dim 1 : vector<1x128xf32>, i32 -> vector<1x128xf32>
    %19 = vector.extract_strided_slice %18 {offsets = [0, 0], sizes = [1, 32], strides = [1, 1]} : vector<1x128xf32> to vector<1x32xf32>
    %c32_i32 = arith.constant 32 : i32
    %20 = tpu.dynamic_rotate %13 by %c32_i32 dim 1 : vector<1x128xf32>, i32 -> vector<1x128xf32>
    %21 = vector.extract_strided_slice %20 {offsets = [0, 0], sizes = [1, 32], strides = [1, 1]} : vector<1x128xf32> to vector<1x32xf32>
    %22 = arith.mulf %17, %2 : vector<1x32xf32>
    %23 = arith.mulf %15, %19 : vector<1x32xf32>
    %24 = arith.addf %22, %23 : vector<1x32xf32>
    %25 = math.tanh %24 : vector<1x32xf32>
    %26 = arith.mulf %21, %25 : vector<1x32xf32>
    %27 = arith.index_cast %c0_i32 : i32 to index
    %c0_9 = arith.constant 0 : index
    %28 = vector.load %arg4[%27, %c0_9] : memref<8x32xf32, #tpu.memory_space<vmem>>, vector<1x32xf32>
    tpu.vector_store %arg4[%27, %c0_9], %26 {strides = array<i32>} : memref<8x32xf32, #tpu.memory_space<vmem>>, vector<1x32xf32>,
    %c1_i32 = arith.constant 1 : i32
    %29 = arith.index_cast %c1_i32 : i32 to index
    %c0_10 = arith.constant 0 : index
    %30 = vector.load %arg0[%29, %c0_10] : memref<8x128xf32, #tpu.memory_space<vmem>>, vector<1x128xf32>
    %cst_11 = arith.constant dense<0.000000e+00> : vector<1x128xf32>
    %31 = tpu.matmul %26, %0, %cst_11 {dimension_numbers = #tpu.dot_dimension_numbers<[1], [0], [0], [1], [0, 0, 1, 1], [], []>} : vector<1x32xf32>, vector<32x128xf32>, vector<1x128xf32> -> vector<1x128xf32>
    %32 = arith.addf %30, %31 : vector<1x128xf32>
    %cst_12 = arith.constant 5.000000e-01 : f32
    %33 = vector.broadcast %cst_12 : f32 to vector<1x128xf32>
    %34 = arith.mulf %33, %32 : vector<1x128xf32>
    %35 = math.tanh %34 : vector<1x128xf32>
    %cst_13 = arith.constant 5.000000e-01 : f32
    %36 = vector.broadcast %cst_13 : f32 to vector<1x128xf32>
    %37 = arith.mulf %36, %35 : vector<1x128xf32>
    %cst_14 = arith.constant 5.000000e-01 : f32
    %38 = vector.broadcast %cst_14 : f32 to vector<1x128xf32>
    %39 = arith.addf %37, %38 : vector<1x128xf32>
    %40 = math.tanh %32 : vector<1x128xf32>
    %41 = vector.extract_strided_slice %39 {offsets = [0, 0], sizes = [1, 32], strides = [1, 1]} : vector<1x128xf32> to vector<1x32xf32>
    %c96_i32_15 = arith.constant 96 : i32
    %42 = tpu.dynamic_rotate %39 by %c96_i32_15 dim 1 : vector<1x128xf32>, i32 -> vector<1x128xf32>
    %43 = vector.extract_strided_slice %42 {offsets = [0, 0], sizes = [1, 32], strides = [1, 1]} : vector<1x128xf32> to vector<1x32xf32>
    %c64_i32_16 = arith.constant 64 : i32
    %44 = tpu.dynamic_rotate %40 by %c64_i32_16 dim 1 : vector<1x128xf32>, i32 -> vector<1x128xf32>
    %45 = vector.extract_strided_slice %44 {offsets = [0, 0], sizes = [1, 32], strides = [1, 1]} : vector<1x128xf32> to vector<1x32xf32>
    %c32_i32_17 = arith.constant 32 : i32
    %46 = tpu.dynamic_rotate %39 by %c32_i32_17 dim 1 : vector<1x128xf32>, i32 -> vector<1x128xf32>
    %47 = vector.extract_strided_slice %46 {offsets = [0, 0], sizes = [1, 32], strides = [1, 1]} : vector<1x128xf32> to vector<1x32xf32>
    %48 = arith.mulf %43, %24 : vector<1x32xf32>
    %49 = arith.mulf %41, %45 : vector<1x32xf32>
    %50 = arith.addf %48, %49 : vector<1x32xf32>
    %51 = math.tanh %50 : vector<1x32xf32>
    %52 = arith.mulf %47, %51 : vector<1x32xf32>
    %53 = arith.index_cast %c1_i32 : i32 to index
    %c0_18 = arith.constant 0 : index
    %54 = vector.load %arg4[%53, %c0_18] : memref<8x32xf32, #tpu.memory_space<vmem>>, vector<1x32xf32>
    tpu.vector_store %arg4[%53, %c0_18], %52 {strides = array<i32>} : memref<8x32xf32, #tpu.memory_space<vmem>>, vector<1x32xf32>,
    %c2_i32 = arith.constant 2 : i32
    %55 = arith.index_cast %c2_i32 : i32 to index
    %c0_19 = arith.constant 0 : index
    %56 = vector.load %arg0[%55, %c0_19] : memref<8x128xf32, #tpu.memory_space<vmem>>, vector<1x128xf32>
    %cst_20 = arith.constant dense<0.000000e+00> : vector<1x128xf32>
    %57 = tpu.matmul %52, %0, %cst_20 {dimension_numbers = #tpu.dot_dimension_numbers<[1], [0], [0], [1], [0, 0, 1, 1], [], []>} : vector<1x32xf32>, vector<32x128xf32>, vector<1x128xf32> -> vector<1x128xf32>
    %58 = arith.addf %56, %57 : vector<1x128xf32>
    %cst_21 = arith.constant 5.000000e-01 : f32
    %59 = vector.broadcast %cst_21 : f32 to vector<1x128xf32>
    %60 = arith.mulf %59, %58 : vector<1x128xf32>
    %61 = math.tanh %60 : vector<1x128xf32>
    %cst_22 = arith.constant 5.000000e-01 : f32
    %62 = vector.broadcast %cst_22 : f32 to vector<1x128xf32>
    %63 = arith.mulf %62, %61 : vector<1x128xf32>
    %cst_23 = arith.constant 5.000000e-01 : f32
    %64 = vector.broadcast %cst_23 : f32 to vector<1x128xf32>
    %65 = arith.addf %63, %64 : vector<1x128xf32>
    %66 = math.tanh %58 : vector<1x128xf32>
    %67 = vector.extract_strided_slice %65 {offsets = [0, 0], sizes = [1, 32], strides = [1, 1]} : vector<1x128xf32> to vector<1x32xf32>
    %c96_i32_24 = arith.constant 96 : i32
    %68 = tpu.dynamic_rotate %65 by %c96_i32_24 dim 1 : vector<1x128xf32>, i32 -> vector<1x128xf32>
    %69 = vector.extract_strided_slice %68 {offsets = [0, 0], sizes = [1, 32], strides = [1, 1]} : vector<1x128xf32> to vector<1x32xf32>
    %c64_i32_25 = arith.constant 64 : i32
    %70 = tpu.dynamic_rotate %66 by %c64_i32_25 dim 1 : vector<1x128xf32>, i32 -> vector<1x128xf32>
    %71 = vector.extract_strided_slice %70 {offsets = [0, 0], sizes = [1, 32], strides = [1, 1]} : vector<1x128xf32> to vector<1x32xf32>
    %c32_i32_26 = arith.constant 32 : i32
    %72 = tpu.dynamic_rotate %65 by %c32_i32_26 dim 1 : vector<1x128xf32>, i32 -> vector<1x128xf32>
    %73 = vector.extract_strided_slice %72 {offsets = [0, 0], sizes = [1, 32], strides = [1, 1]} : vector<1x128xf32> to vector<1x32xf32>
    %74 = arith.mulf %69, %50 : vector<1x32xf32>
    %75 = arith.mulf %67, %71 : vector<1x32xf32>
    %76 = arith.addf %74, %75 : vector<1x32xf32>
    %77 = math.tanh %76 : vector<1x32xf32>
    %78 = arith.mulf %73, %77 : vector<1x32xf32>
    %79 = arith.index_cast %c2_i32 : i32 to index
    %c0_27 = arith.constant 0 : index
    %80 = vector.load %arg4[%79, %c0_27] : memref<8x32xf32, #tpu.memory_space<vmem>>, vector<1x32xf32>
    tpu.vector_store %arg4[%79, %c0_27], %78 {strides = array<i32>} : memref<8x32xf32, #tpu.memory_space<vmem>>, vector<1x32xf32>,
    %c3_i32 = arith.constant 3 : i32
    %81 = arith.index_cast %c3_i32 : i32 to index
    %c0_28 = arith.constant 0 : index
    %82 = vector.load %arg0[%81, %c0_28] : memref<8x128xf32, #tpu.memory_space<vmem>>, vector<1x128xf32>
    %cst_29 = arith.constant dense<0.000000e+00> : vector<1x128xf32>
    %83 = tpu.matmul %78, %0, %cst_29 {dimension_numbers = #tpu.dot_dimension_numbers<[1], [0], [0], [1], [0, 0, 1, 1], [], []>} : vector<1x32xf32>, vector<32x128xf32>, vector<1x128xf32> -> vector<1x128xf32>
    %84 = arith.addf %82, %83 : vector<1x128xf32>
    %cst_30 = arith.constant 5.000000e-01 : f32
    %85 = vector.broadcast %cst_30 : f32 to vector<1x128xf32>
    %86 = arith.mulf %85, %84 : vector<1x128xf32>
    %87 = math.tanh %86 : vector<1x128xf32>
    %cst_31 = arith.constant 5.000000e-01 : f32
    %88 = vector.broadcast %cst_31 : f32 to vector<1x128xf32>
    %89 = arith.mulf %88, %87 : vector<1x128xf32>
    %cst_32 = arith.constant 5.000000e-01 : f32
    %90 = vector.broadcast %cst_32 : f32 to vector<1x128xf32>
    %91 = arith.addf %89, %90 : vector<1x128xf32>
    %92 = math.tanh %84 : vector<1x128xf32>
    %93 = vector.extract_strided_slice %91 {offsets = [0, 0], sizes = [1, 32], strides = [1, 1]} : vector<1x128xf32> to vector<1x32xf32>
    %c96_i32_33 = arith.constant 96 : i32
    %94 = tpu.dynamic_rotate %91 by %c96_i32_33 dim 1 : vector<1x128xf32>, i32 -> vector<1x128xf32>
    %95 = vector.extract_strided_slice %94 {offsets = [0, 0], sizes = [1, 32], strides = [1, 1]} : vector<1x128xf32> to vector<1x32xf32>
    %c64_i32_34 = arith.constant 64 : i32
    %96 = tpu.dynamic_rotate %92 by %c64_i32_34 dim 1 : vector<1x128xf32>, i32 -> vector<1x128xf32>
    %97 = vector.extract_strided_slice %96 {offsets = [0, 0], sizes = [1, 32], strides = [1, 1]} : vector<1x128xf32> to vector<1x32xf32>
    %c32_i32_35 = arith.constant 32 : i32
    %98 = tpu.dynamic_rotate %91 by %c32_i32_35 dim 1 : vector<1x128xf32>, i32 -> vector<1x128xf32>
    %99 = vector.extract_strided_slice %98 {offsets = [0, 0], sizes = [1, 32], strides = [1, 1]} : vector<1x128xf32> to vector<1x32xf32>
    %100 = arith.mulf %95, %76 : vector<1x32xf32>
    %101 = arith.mulf %93, %97 : vector<1x32xf32>
    %102 = arith.addf %100, %101 : vector<1x32xf32>
    %103 = math.tanh %102 : vector<1x32xf32>
    %104 = arith.mulf %99, %103 : vector<1x32xf32>
    %105 = arith.index_cast %c3_i32 : i32 to index
    %c0_36 = arith.constant 0 : index
    %106 = vector.load %arg4[%105, %c0_36] : memref<8x32xf32, #tpu.memory_space<vmem>>, vector<1x32xf32>
    tpu.vector_store %arg4[%105, %c0_36], %104 {strides = array<i32>} : memref<8x32xf32, #tpu.memory_space<vmem>>, vector<1x32xf32>,
    %c4_i32 = arith.constant 4 : i32
    %107 = arith.index_cast %c4_i32 : i32 to index
    %c0_37 = arith.constant 0 : index
    %108 = vector.load %arg0[%107, %c0_37] : memref<8x128xf32, #tpu.memory_space<vmem>>, vector<1x128xf32>
    %cst_38 = arith.constant dense<0.000000e+00> : vector<1x128xf32>
    %109 = tpu.matmul %104, %0, %cst_38 {dimension_numbers = #tpu.dot_dimension_numbers<[1], [0], [0], [1], [0, 0, 1, 1], [], []>} : vector<1x32xf32>, vector<32x128xf32>, vector<1x128xf32> -> vector<1x128xf32>
    %110 = arith.addf %108, %109 : vector<1x128xf32>
    %cst_39 = arith.constant 5.000000e-01 : f32
    %111 = vector.broadcast %cst_39 : f32 to vector<1x128xf32>
    %112 = arith.mulf %111, %110 : vector<1x128xf32>
    %113 = math.tanh %112 : vector<1x128xf32>
    %cst_40 = arith.constant 5.000000e-01 : f32
    %114 = vector.broadcast %cst_40 : f32 to vector<1x128xf32>
    %115 = arith.mulf %114, %113 : vector<1x128xf32>
    %cst_41 = arith.constant 5.000000e-01 : f32
    %116 = vector.broadcast %cst_41 : f32 to vector<1x128xf32>
    %117 = arith.addf %115, %116 : vector<1x128xf32>
    %118 = math.tanh %110 : vector<1x128xf32>
    %119 = vector.extract_strided_slice %117 {offsets = [0, 0], sizes = [1, 32], strides = [1, 1]} : vector<1x128xf32> to vector<1x32xf32>
    %c96_i32_42 = arith.constant 96 : i32
    %120 = tpu.dynamic_rotate %117 by %c96_i32_42 dim 1 : vector<1x128xf32>, i32 -> vector<1x128xf32>
    %121 = vector.extract_strided_slice %120 {offsets = [0, 0], sizes = [1, 32], strides = [1, 1]} : vector<1x128xf32> to vector<1x32xf32>
    %c64_i32_43 = arith.constant 64 : i32
    %122 = tpu.dynamic_rotate %118 by %c64_i32_43 dim 1 : vector<1x128xf32>, i32 -> vector<1x128xf32>
    %123 = vector.extract_strided_slice %122 {offsets = [0, 0], sizes = [1, 32], strides = [1, 1]} : vector<1x128xf32> to vector<1x32xf32>
    %c32_i32_44 = arith.constant 32 : i32
    %124 = tpu.dynamic_rotate %117 by %c32_i32_44 dim 1 : vector<1x128xf32>, i32 -> vector<1x128xf32>
    %125 = vector.extract_strided_slice %124 {offsets = [0, 0], sizes = [1, 32], strides = [1, 1]} : vector<1x128xf32> to vector<1x32xf32>
    %126 = arith.mulf %121, %102 : vector<1x32xf32>
    %127 = arith.mulf %119, %123 : vector<1x32xf32>
    %128 = arith.addf %126, %127 : vector<1x32xf32>
    %129 = math.tanh %128 : vector<1x32xf32>
    %130 = arith.mulf %125, %129 : vector<1x32xf32>
    %131 = arith.index_cast %c4_i32 : i32 to index
    %c0_45 = arith.constant 0 : index
    %132 = vector.load %arg4[%131, %c0_45] : memref<8x32xf32, #tpu.memory_space<vmem>>, vector<1x32xf32>
    tpu.vector_store %arg4[%131, %c0_45], %130 {strides = array<i32>} : memref<8x32xf32, #tpu.memory_space<vmem>>, vector<1x32xf32>,
    %c5_i32 = arith.constant 5 : i32
    %133 = arith.index_cast %c5_i32 : i32 to index
    %c0_46 = arith.constant 0 : index
    %134 = vector.load %arg0[%133, %c0_46] : memref<8x128xf32, #tpu.memory_space<vmem>>, vector<1x128xf32>
    %cst_47 = arith.constant dense<0.000000e+00> : vector<1x128xf32>
    %135 = tpu.matmul %130, %0, %cst_47 {dimension_numbers = #tpu.dot_dimension_numbers<[1], [0], [0], [1], [0, 0, 1, 1], [], []>} : vector<1x32xf32>, vector<32x128xf32>, vector<1x128xf32> -> vector<1x128xf32>
    %136 = arith.addf %134, %135 : vector<1x128xf32>
    %cst_48 = arith.constant 5.000000e-01 : f32
    %137 = vector.broadcast %cst_48 : f32 to vector<1x128xf32>
    %138 = arith.mulf %137, %136 : vector<1x128xf32>
    %139 = math.tanh %138 : vector<1x128xf32>
    %cst_49 = arith.constant 5.000000e-01 : f32
    %140 = vector.broadcast %cst_49 : f32 to vector<1x128xf32>
    %141 = arith.mulf %140, %139 : vector<1x128xf32>
    %cst_50 = arith.constant 5.000000e-01 : f32
    %142 = vector.broadcast %cst_50 : f32 to vector<1x128xf32>
    %143 = arith.addf %141, %142 : vector<1x128xf32>
    %144 = math.tanh %136 : vector<1x128xf32>
    %145 = vector.extract_strided_slice %143 {offsets = [0, 0], sizes = [1, 32], strides = [1, 1]} : vector<1x128xf32> to vector<1x32xf32>
    %c96_i32_51 = arith.constant 96 : i32
    %146 = tpu.dynamic_rotate %143 by %c96_i32_51 dim 1 : vector<1x128xf32>, i32 -> vector<1x128xf32>
    %147 = vector.extract_strided_slice %146 {offsets = [0, 0], sizes = [1, 32], strides = [1, 1]} : vector<1x128xf32> to vector<1x32xf32>
    %c64_i32_52 = arith.constant 64 : i32
    %148 = tpu.dynamic_rotate %144 by %c64_i32_52 dim 1 : vector<1x128xf32>, i32 -> vector<1x128xf32>
    %149 = vector.extract_strided_slice %148 {offsets = [0, 0], sizes = [1, 32], strides = [1, 1]} : vector<1x128xf32> to vector<1x32xf32>
    %c32_i32_53 = arith.constant 32 : i32
    %150 = tpu.dynamic_rotate %143 by %c32_i32_53 dim 1 : vector<1x128xf32>, i32 -> vector<1x128xf32>
    %151 = vector.extract_strided_slice %150 {offsets = [0, 0], sizes = [1, 32], strides = [1, 1]} : vector<1x128xf32> to vector<1x32xf32>
    %152 = arith.mulf %147, %128 : vector<1x32xf32>
    %153 = arith.mulf %145, %149 : vector<1x32xf32>
    %154 = arith.addf %152, %153 : vector<1x32xf32>
    %155 = math.tanh %154 : vector<1x32xf32>
    %156 = arith.mulf %151, %155 : vector<1x32xf32>
    %157 = arith.index_cast %c5_i32 : i32 to index
    %c0_54 = arith.constant 0 : index
    %158 = vector.load %arg4[%157, %c0_54] : memref<8x32xf32, #tpu.memory_space<vmem>>, vector<1x32xf32>
    tpu.vector_store %arg4[%157, %c0_54], %156 {strides = array<i32>} : memref<8x32xf32, #tpu.memory_space<vmem>>, vector<1x32xf32>,
    %c6_i32 = arith.constant 6 : i32
    %159 = arith.index_cast %c6_i32 : i32 to index
    %c0_55 = arith.constant 0 : index
    %160 = vector.load %arg0[%159, %c0_55] : memref<8x128xf32, #tpu.memory_space<vmem>>, vector<1x128xf32>
    %cst_56 = arith.constant dense<0.000000e+00> : vector<1x128xf32>
    %161 = tpu.matmul %156, %0, %cst_56 {dimension_numbers = #tpu.dot_dimension_numbers<[1], [0], [0], [1], [0, 0, 1, 1], [], []>} : vector<1x32xf32>, vector<32x128xf32>, vector<1x128xf32> -> vector<1x128xf32>
    %162 = arith.addf %160, %161 : vector<1x128xf32>
    %cst_57 = arith.constant 5.000000e-01 : f32
    %163 = vector.broadcast %cst_57 : f32 to vector<1x128xf32>
    %164 = arith.mulf %163, %162 : vector<1x128xf32>
    %165 = math.tanh %164 : vector<1x128xf32>
    %cst_58 = arith.constant 5.000000e-01 : f32
    %166 = vector.broadcast %cst_58 : f32 to vector<1x128xf32>
    %167 = arith.mulf %166, %165 : vector<1x128xf32>
    %cst_59 = arith.constant 5.000000e-01 : f32
    %168 = vector.broadcast %cst_59 : f32 to vector<1x128xf32>
    %169 = arith.addf %167, %168 : vector<1x128xf32>
    %170 = math.tanh %162 : vector<1x128xf32>
    %171 = vector.extract_strided_slice %169 {offsets = [0, 0], sizes = [1, 32], strides = [1, 1]} : vector<1x128xf32> to vector<1x32xf32>
    %c96_i32_60 = arith.constant 96 : i32
    %172 = tpu.dynamic_rotate %169 by %c96_i32_60 dim 1 : vector<1x128xf32>, i32 -> vector<1x128xf32>
    %173 = vector.extract_strided_slice %172 {offsets = [0, 0], sizes = [1, 32], strides = [1, 1]} : vector<1x128xf32> to vector<1x32xf32>
    %c64_i32_61 = arith.constant 64 : i32
    %174 = tpu.dynamic_rotate %170 by %c64_i32_61 dim 1 : vector<1x128xf32>, i32 -> vector<1x128xf32>
    %175 = vector.extract_strided_slice %174 {offsets = [0, 0], sizes = [1, 32], strides = [1, 1]} : vector<1x128xf32> to vector<1x32xf32>
    %c32_i32_62 = arith.constant 32 : i32
    %176 = tpu.dynamic_rotate %169 by %c32_i32_62 dim 1 : vector<1x128xf32>, i32 -> vector<1x128xf32>
    %177 = vector.extract_strided_slice %176 {offsets = [0, 0], sizes = [1, 32], strides = [1, 1]} : vector<1x128xf32> to vector<1x32xf32>
    %178 = arith.mulf %173, %154 : vector<1x32xf32>
    %179 = arith.mulf %171, %175 : vector<1x32xf32>
    %180 = arith.addf %178, %179 : vector<1x32xf32>
    %181 = math.tanh %180 : vector<1x32xf32>
    %182 = arith.mulf %177, %181 : vector<1x32xf32>
    %183 = arith.index_cast %c6_i32 : i32 to index
    %c0_63 = arith.constant 0 : index
    %184 = vector.load %arg4[%183, %c0_63] : memref<8x32xf32, #tpu.memory_space<vmem>>, vector<1x32xf32>
    tpu.vector_store %arg4[%183, %c0_63], %182 {strides = array<i32>} : memref<8x32xf32, #tpu.memory_space<vmem>>, vector<1x32xf32>,
    %c7_i32 = arith.constant 7 : i32
    %185 = arith.index_cast %c7_i32 : i32 to index
    %c0_64 = arith.constant 0 : index
    %186 = vector.load %arg0[%185, %c0_64] : memref<8x128xf32, #tpu.memory_space<vmem>>, vector<1x128xf32>
    %cst_65 = arith.constant dense<0.000000e+00> : vector<1x128xf32>
    %187 = tpu.matmul %182, %0, %cst_65 {dimension_numbers = #tpu.dot_dimension_numbers<[1], [0], [0], [1], [0, 0, 1, 1], [], []>} : vector<1x32xf32>, vector<32x128xf32>, vector<1x128xf32> -> vector<1x128xf32>
    %188 = arith.addf %186, %187 : vector<1x128xf32>
    %cst_66 = arith.constant 5.000000e-01 : f32
    %189 = vector.broadcast %cst_66 : f32 to vector<1x128xf32>
    %190 = arith.mulf %189, %188 : vector<1x128xf32>
    %191 = math.tanh %190 : vector<1x128xf32>
    %cst_67 = arith.constant 5.000000e-01 : f32
    %192 = vector.broadcast %cst_67 : f32 to vector<1x128xf32>
    %193 = arith.mulf %192, %191 : vector<1x128xf32>
    %cst_68 = arith.constant 5.000000e-01 : f32
    %194 = vector.broadcast %cst_68 : f32 to vector<1x128xf32>
    %195 = arith.addf %193, %194 : vector<1x128xf32>
    %196 = math.tanh %188 : vector<1x128xf32>
    %197 = vector.extract_strided_slice %195 {offsets = [0, 0], sizes = [1, 32], strides = [1, 1]} : vector<1x128xf32> to vector<1x32xf32>
    %c96_i32_69 = arith.constant 96 : i32
    %198 = tpu.dynamic_rotate %195 by %c96_i32_69 dim 1 : vector<1x128xf32>, i32 -> vector<1x128xf32>
    %199 = vector.extract_strided_slice %198 {offsets = [0, 0], sizes = [1, 32], strides = [1, 1]} : vector<1x128xf32> to vector<1x32xf32>
    %c64_i32_70 = arith.constant 64 : i32
    %200 = tpu.dynamic_rotate %196 by %c64_i32_70 dim 1 : vector<1x128xf32>, i32 -> vector<1x128xf32>
    %201 = vector.extract_strided_slice %200 {offsets = [0, 0], sizes = [1, 32], strides = [1, 1]} : vector<1x128xf32> to vector<1x32xf32>
    %c32_i32_71 = arith.constant 32 : i32
    %202 = tpu.dynamic_rotate %195 by %c32_i32_71 dim 1 : vector<1x128xf32>, i32 -> vector<1x128xf32>
    %203 = vector.extract_strided_slice %202 {offsets = [0, 0], sizes = [1, 32], strides = [1, 1]} : vector<1x128xf32> to vector<1x32xf32>
    %204 = arith.mulf %199, %180 : vector<1x32xf32>
    %205 = arith.mulf %197, %201 : vector<1x32xf32>
    %206 = arith.addf %204, %205 : vector<1x32xf32>
    %207 = math.tanh %206 : vector<1x32xf32>
    %208 = arith.mulf %203, %207 : vector<1x32xf32>
    %209 = arith.index_cast %c7_i32 : i32 to index
    %c0_72 = arith.constant 0 : index
    %210 = vector.load %arg4[%209, %c0_72] : memref<8x32xf32, #tpu.memory_space<vmem>>, vector<1x32xf32>
    tpu.vector_store %arg4[%209, %c0_72], %208 {strides = array<i32>} : memref<8x32xf32, #tpu.memory_space<vmem>>, vector<1x32xf32>,
    %c8_i32 = arith.constant 8 : i32
    %c0_73 = arith.constant 0 : index
    %c0_74 = arith.constant 0 : index
    %211 = vector.load %arg5[%c0_73, %c0_74] : memref<1x32xf32, #tpu.memory_space<vmem>>, vector<1x32xf32>
    tpu.vector_store %arg5[%c0_73, %c0_74], %208 {strides = array<i32>} : memref<1x32xf32, #tpu.memory_space<vmem>>, vector<1x32xf32>,
    %c0_75 = arith.constant 0 : index
    %c0_76 = arith.constant 0 : index
    %212 = vector.load %arg6[%c0_75, %c0_76] : memref<1x32xf32, #tpu.memory_space<vmem>>, vector<1x32xf32>
    tpu.vector_store %arg6[%c0_75, %c0_76], %206 {strides = array<i32>} : memref<1x32xf32, #tpu.memory_space<vmem>>, vector<1x32xf32>,
    return
  }
}

</mosaic_0001>

<bundles_post_ra>
// kernel: tpu_custom_call.1
= control target key start
LH: loop header
LB: loop body
LE: loop exit
PB: predicated region body
PF: predicated region fallthrough
CT: control target
= control target key end

     0   :  { %12 = vsyncpa [#allocation3], 0  ;;  %s749_s0 = inlined_call_operand.hbm [shape: f32[8,128], index: 0, kind: input, shape index: {}]   ;;  %s750_s1 = inlined_call_operand.hbm [shape: f32[32,128], index: 1, kind: input, shape index: {}]   ;;  %s751_s2 = inlined_call_operand.vmem [shape: f32[1,32], index: 2, kind: input, shape index: {}]   ;;  %s752_s3 = inlined_call_operand.vmem [shape: f32[1,32], index: 3, kind: input, shape index: {}]   ;;  %s753_s4 = inlined_call_operand.hbm [shape: f32[8,32], index: 4, kind: output, shape index: {0}]   ;;  %s754_s5 = inlined_call_operand.hbm [shape: f32[1,32], index: 5, kind: output, shape index: {1}]   ;;  %s755_s6 = inlined_call_operand.hbm [shape: f32[1,32], index: 6, kind: output, shape index: {2}]  }
   0x1   :  { %13 = vsyncpa [#allocation6], 0 }
   0x2   :  { %14 = vsyncpa [#allocation4], 0 }
   0x3   :  { %15 = vsyncpa [#allocation9], 0  ;;  %s21_s23 = sshll.u32 %s749_s0, 4  ;;  %s641_s24 = smov [#allocation2]   ;;  %s22_s23 = int_to_ptr.hbm [resolvable:$true] %s21_s23 }
   0x4   :  { %s23_s25 = sshll.u32 %s641_s24, 4  ;;  %s31_s28 = sshll.u32 %s750_s1, 4  ;;  %s24_s25 = int_to_ptr.vmem [resolvable:$true] %s23_s25  ;;  %s32_s28 = int_to_ptr.hbm [resolvable:$true] %s31_s28 }
   0x5   :  { %26 = dma.hbm_to_vmem [thread:$0]  %s22_s23, 128, %s24_s25, [#allocation3]  }
   0x6   :  { %s642_s29 = smov [#allocation5]   ;;  %s643_s7 = smov 128  }
   0x7   :  { %s33_s30 = sshll.u32 %s642_s29, 4  ;;  %s644_s8 = smov 8   ;;  %s34_s30 = int_to_ptr.vmem [resolvable:$true] %s33_s30 }
   0x8   :  { %39 = dma.hbm_to_vmem [thread:$0]  %s32_s28, 512, %s34_s30, [#allocation6], %s643_s7, %s643_s7, %s644_s8  }
   0x9   :  { %633 = dma.done.wait [#allocation3], 128  }
   0xa   :  { %634 = vsyncadd [#allocation3], 4294967168 }
   0xb   :  { %635 = dma.done.wait [#allocation6], 512  }
   0xc   :  { %636 = vsyncadd [#allocation6], 4294966784  ;;  %v55_v0 = vld [vmem:[#allocation5 + $0x18] sm:$0xff]  ;;  %v54_v1 = vld [vmem:[#allocation5 + $0x10] sm:$0xff]  ;;  %vm59_vm0 = vcmask 261120   ;;  %s646_s9 = smov 96  }
   0xd   :  { %75 = vmatpush.msra.mxu0 %v55_v0  ;;  %118 = vmatpush.msra.mxu1 %v55_v0  ;;  %v53_v2 = vld [vmem:[#allocation5 + $0x8] sm:$0xff]  ;;  %v52_v3 = vld [vmem:[#allocation5] sm:$0xff]  ;;  %v56_v4 = vld [vmem:[%s751_s2] sm:$0x1]  ;;  %s645_s2 = smov 32   ;;  %s647_s10 = smov 64  }
   0xe   :  { %160 = vmatpush.msra.mxu2 %v55_v0  ;;  %202 = vmatpush.msra.mxu3 %v55_v0  ;;  %v58_v5 = vld [vmem:[#allocation2] sm:$0x1]  ;;  %vm100_vm1 = vcmask 253952   ;;  %v102_v22 = vld [vmem:[#allocation2 + $0x1] sm:$0x1]  ;;  %s405_s16 = sshll.u32 %s753_s4, 4  ;;  %s406_s16 = int_to_ptr.hbm [resolvable:$true] %s405_s16 }
   0xf   :  { %76 = vmatpush.msra.mxu0 %v54_v1  ;;  %119 = vmatpush.msra.mxu1 %v54_v1  ;;  %v57_v14 = vld [vmem:[%s752_s3] sm:$0x1]  ;;  %v144_v38 = vld [vmem:[#allocation2 + $0x2] sm:$0x1]  ;;  %v186_v54 = vld [vmem:[#allocation2 + $0x3] sm:$0x1] }
  0x10   :  { %161 = vmatpush.msra.mxu2 %v54_v1  ;;  %203 = vmatpush.msra.mxu3 %v54_v1  ;;  %s648_s3 = smov [#allocation7]   ;;  %s649_s17 = smov [#allocation8]  }
  0x11   :  { %77 = vmatpush.msra.mxu0 %v53_v2  ;;  %120 = vmatpush.msra.mxu1 %v53_v2  ;;  %s403_s13 = sshll.u32 %s648_s3, 4  ;;  %s414_s18 = sshll.u32 %s649_s17, 4  ;;  %s404_s13 = int_to_ptr.vmem [resolvable:$true] %s403_s13  ;;  %s415_s18 = int_to_ptr.vmem [resolvable:$true] %s414_s18 }
  0x12   :  { %162 = vmatpush.msra.mxu2 %v53_v2  ;;  %204 = vmatpush.msra.mxu3 %v53_v2  ;;  %s416_s21 = sshll.u32 %s754_s5, 4  ;;  %s650_s22 = smov [#allocation10]   ;;  %s417_s21 = int_to_ptr.hbm [resolvable:$true] %s416_s21 }
  0x13   :  { %78 = vmatpush.msra.mxu0 %v52_v3  ;;  %121 = vmatpush.msra.mxu1 %v52_v3  ;;  %s425_s23 = sshll.u32 %s650_s22, 4  ;;  %s427_s26 = sshll.u32 %s755_s6, 4  ;;  %s426_s23 = int_to_ptr.vmem [resolvable:$true] %s425_s23  ;;  %s428_s26 = int_to_ptr.hbm [resolvable:$true] %s427_s26 }
  0x14   :  { %447 = vmatmul.msk.f32.vlgmr.msra.gmra.mxu0 %vm59_vm0, %v56_v4  ;;  %163 = vmatpush.msra.mxu2 %v52_v3 }
  0x15   :  { %205 = vmatpush.msra.mxu3 %v52_v3  ;;  %244 = vmatpush.msrb.mxu0 %v55_v0 }
  0x16   :  { %286 = vmatpush.msrb.mxu1 %v55_v0  ;;  %328 = vmatpush.msrb.mxu2 %v55_v0 }
  0x17   :  { %245 = vmatpush.msrb.mxu0 %v54_v1  ;;  %370 = vmatpush.msrb.mxu3 %v55_v0 }
  0x18   :  { %287 = vmatpush.msrb.mxu1 %v54_v1  ;;  %329 = vmatpush.msrb.mxu2 %v54_v1 }
  0x19   :  { %246 = vmatpush.msrb.mxu0 %v53_v2  ;;  %371 = vmatpush.msrb.mxu3 %v54_v1 }
  0x1a   :  { %288 = vmatpush.msrb.mxu1 %v53_v2  ;;  %330 = vmatpush.msrb.mxu2 %v53_v2 }
  0x1b   :  { %247 = vmatpush.msrb.mxu0 %v52_v3  ;;  %372 = vmatpush.msrb.mxu3 %v53_v2 }
  0x1c   :  { %289 = vmatpush.msrb.mxu1 %v52_v3  ;;  %331 = vmatpush.msrb.mxu2 %v52_v3 }
  0x1d   :  { %373 = vmatpush.msrb.mxu3 %v52_v3 }
  0x91   :  { %v80_v6 = vpop.f32.mrf.mxu0 }
  0x92   :  { %v83_v7 = vadd.f32 %v80_v6, %v58_v5  ;;  %v228_v6 = vld [vmem:[#allocation2 + $0x4] sm:$0x1] }
  0x94   :  { %v84_v8 = vmul.f32 0.5, %v83_v7 }
  0x96   :  { %465 = vtanh.f32 %v84_v8 }
  0x97   :  { %467 = vtanh.f32 %v83_v7 }
  0x9c   :  { %v466_v9 = vpop.eup %465 }
  0x9d   :  { %v86_v10 = vmul.f32 0.5, %v466_v9  ;;  %v468_v12 = vpop.eup %467 }
  0x9f   :  { %v87_v11 = vadd.f32 0.5, %v86_v10 }
  0xa1   :  { %93 = vrot.lane.b32.xlu1 %v87_v11, %s645_s2  ;;  %89 = vrot.lane.b32.xlu0 %v87_v11, %s646_s9 }
  0xa9   :  { %91 = vrot.lane.b32.xlu0 %v468_v12, %s647_s10 }
 0x113   :  { %v90_v13 = vpop.permute.xlu0 %89  ;;  %v94_v20 = vpop.permute.xlu1 %93 }
 0x114   :  { %v95_v16 = vmul.f32 %v90_v13, %v57_v14 }
 0x11b   :  { %v92_v15 = vpop.permute.xlu0 %91 }
 0x11c   :  { %v96_v17 = vmul.f32 %v92_v15, %v87_v11 }
 0x11e   :  { %v97_v18 = vadd.f32 %v96_v17, %v95_v16 }
 0x120   :  { %469 = vtanh.f32 %v97_v18 }
 0x126   :  { %v470_v19 = vpop.eup %469 }
 0x127   :  { %v99_v21 = vmul.f32 %v470_v19, %v94_v20 }
 0x129   :  { %101 = vst.msk [vmem:[#allocation7] sm:$0x1] %vm100_vm1, %v99_v21  ;;  %448 = vmatmul.msk.f32.vlgmr.msra.gmra.mxu1 %vm59_vm0, %v99_v21 }
 0x1a6   :  { %v123_v23 = vpop.f32.mrf.mxu1 }
 0x1a7   :  { %v126_v24 = vadd.f32 %v123_v23, %v102_v22  ;;  %v270_v22 = vld [vmem:[#allocation2 + $0x5] sm:$0x1] }
 0x1a9   :  { %v127_v25 = vmul.f32 0.5, %v126_v24  ;;  %471 = vtanh.f32 %v126_v24 }
 0x1ab   :  { %473 = vtanh.f32 %v127_v25 }
 0x1af   :  { %v472_v26 = vpop.eup %471 }
 0x1b0   :  { %134 = vrot.lane.b32.xlu2 %v472_v26, %s647_s10 }
 0x1b1   :  { %v474_v27 = vpop.eup %473 }
 0x1b2   :  { %v129_v28 = vmul.f32 0.5, %v474_v27 }
 0x1b4   :  { %v130_v29 = vadd.f32 0.5, %v129_v28 }
 0x1b6   :  { %132 = vrot.lane.b32.xlu1 %v130_v29, %s646_s9 }
 0x1b8   :  { %136 = vrot.lane.b32.xlu2 %v130_v29, %s645_s2 }
 0x20a   :  { %v135_v30 = vpop.permute.xlu2 %134 }
 0x20b   :  { %v139_v32 = vmul.f32 %v135_v30, %v130_v29 }
 0x212   :  { %v137_v36 = vpop.permute.xlu2 %136 }
 0x228   :  { %v133_v31 = vpop.permute.xlu1 %132 }
 0x229   :  { %v138_v33 = vmul.f32 %v133_v31, %v97_v18 }
 0x22b   :  { %v140_v34 = vadd.f32 %v139_v32, %v138_v33 }
 0x22d   :  { %475 = vtanh.f32 %v140_v34 }
 0x233   :  { %v476_v35 = vpop.eup %475 }
 0x234   :  { %v142_v37 = vmul.f32 %v476_v35, %v137_v36 }
 0x236   :  { %143 = vst.msk [vmem:[#allocation7 + $0x1] sm:$0x1] %vm100_vm1, %v142_v37  ;;  %449 = vmatmul.msk.f32.vlgmr.msra.gmra.mxu2 %vm59_vm0, %v142_v37 }
 0x2b9   :  { %v165_v39 = vpop.f32.mrf.mxu2 }
 0x2ba   :  { %v168_v40 = vadd.f32 %v165_v39, %v144_v38  ;;  %v312_v38 = vld [vmem:[#allocation2 + $0x6] sm:$0x1] }
 0x2bc   :  { %v169_v41 = vmul.f32 0.5, %v168_v40  ;;  %477 = vtanh.f32 %v168_v40 }
 0x2be   :  { %479 = vtanh.f32 %v169_v41 }
 0x2c2   :  { %v478_v42 = vpop.eup %477 }
 0x2c3   :  { %176 = vrot.lane.b32.xlu1 %v478_v42, %s647_s10 }
 0x2c4   :  { %v480_v43 = vpop.eup %479 }
 0x2c5   :  { %v171_v44 = vmul.f32 0.5, %v480_v43 }
 0x2c7   :  { %v172_v45 = vadd.f32 0.5, %v171_v44 }
 0x2c9   :  { %178 = vrot.lane.b32.xlu2 %v172_v45, %s645_s2  ;;  %174 = vrot.lane.b32.xlu0 %v172_v45, %s646_s9 }
 0x323   :  { %v179_v52 = vpop.permute.xlu2 %178 }
 0x335   :  { %v177_v46 = vpop.permute.xlu1 %176 }
 0x336   :  { %v181_v48 = vmul.f32 %v177_v46, %v172_v45 }
 0x33b   :  { %v175_v47 = vpop.permute.xlu0 %174 }
 0x33c   :  { %v180_v49 = vmul.f32 %v175_v47, %v140_v34 }
 0x33e   :  { %v182_v50 = vadd.f32 %v181_v48, %v180_v49 }
 0x340   :  { %481 = vtanh.f32 %v182_v50 }
 0x346   :  { %v482_v51 = vpop.eup %481 }
 0x347   :  { %v184_v53 = vmul.f32 %v482_v51, %v179_v52 }
 0x349   :  { %185 = vst.msk [vmem:[#allocation7 + $0x2] sm:$0x1] %vm100_vm1, %v184_v53  ;;  %450 = vmatmul.msk.f32.vlgmr.msra.gmra.mxu3 %vm59_vm0, %v184_v53 }
 0x3cc   :  { %v207_v55 = vpop.f32.mrf.mxu3 }
 0x3cd   :  { %v210_v56 = vadd.f32 %v207_v55, %v186_v54  ;;  %v354_v54 = vld [vmem:[#allocation2 + $0x7] sm:$0x1] }
 0x3cf   :  { %v211_v57 = vmul.f32 0.5, %v210_v56  ;;  %483 = vtanh.f32 %v210_v56 }
 0x3d1   :  { %485 = vtanh.f32 %v211_v57 }
 0x3d5   :  { %v484_v58 = vpop.eup %483 }
 0x3d6   :  { %218 = vrot.lane.b32.xlu1 %v484_v58, %s647_s10 }
 0x3d7   :  { %v486_v59 = vpop.eup %485 }
 0x3d8   :  { %v213_v60 = vmul.f32 0.5, %v486_v59 }
 0x3da   :  { %v214_v61 = vadd.f32 0.5, %v213_v60 }
 0x3dc   :  { %220 = vrot.lane.b32.xlu2 %v214_v61, %s645_s2  ;;  %216 = vrot.lane.b32.xlu0 %v214_v61, %s646_s9 }
 0x436   :  { %v221_v4 = vpop.permute.xlu2 %220 }
 0x448   :  { %v219_v62 = vpop.permute.xlu1 %218 }
 0x449   :  { %v223_v0 = vmul.f32 %v219_v62, %v214_v61 }
 0x44e   :  { %v217_v63 = vpop.permute.xlu0 %216 }
 0x44f   :  { %v222_v1 = vmul.f32 %v217_v63, %v182_v50 }
 0x451   :  { %v224_v2 = vadd.f32 %v223_v0, %v222_v1 }
 0x453   :  { %487 = vtanh.f32 %v224_v2 }
 0x459   :  { %v488_v3 = vpop.eup %487 }
 0x45a   :  { %v226_v5 = vmul.f32 %v488_v3, %v221_v4 }
 0x45c   :  { %227 = vst.msk [vmem:[#allocation7 + $0x3] sm:$0x1] %vm100_vm1, %v226_v5  ;;  %451 = vmatmul.msk.f32.vlgmr.msrb.gmra.mxu0 %vm59_vm0, %v226_v5 }
 0x4d9   :  { %v249_v7 = vpop.f32.mrf.mxu0 }
 0x4da   :  { %v252_v8 = vadd.f32 %v249_v7, %v228_v6 }
 0x4dc   :  { %v253_v9 = vmul.f32 0.5, %v252_v8  ;;  %489 = vtanh.f32 %v252_v8 }
 0x4de   :  { %491 = vtanh.f32 %v253_v9 }
 0x4e2   :  { %v490_v10 = vpop.eup %489 }
 0x4e3   :  { %260 = vrot.lane.b32.xlu1 %v490_v10, %s647_s10 }
 0x4e4   :  { %v492_v11 = vpop.eup %491 }
 0x4e5   :  { %v255_v12 = vmul.f32 0.5, %v492_v11 }
 0x4e7   :  { %v256_v13 = vadd.f32 0.5, %v255_v12 }
 0x4e9   :  { %262 = vrot.lane.b32.xlu2 %v256_v13, %s645_s2  ;;  %258 = vrot.lane.b32.xlu0 %v256_v13, %s646_s9 }
 0x543   :  { %v263_v20 = vpop.permute.xlu2 %262 }
 0x555   :  { %v261_v14 = vpop.permute.xlu1 %260 }
 0x556   :  { %v265_v16 = vmul.f32 %v261_v14, %v256_v13 }
 0x55b   :  { %v259_v15 = vpop.permute.xlu0 %258 }
 0x55c   :  { %v264_v17 = vmul.f32 %v259_v15, %v224_v2 }
 0x55e   :  { %v266_v18 = vadd.f32 %v265_v16, %v264_v17 }
 0x560   :  { %493 = vtanh.f32 %v266_v18 }
 0x566   :  { %v494_v19 = vpop.eup %493 }
 0x567   :  { %v268_v21 = vmul.f32 %v494_v19, %v263_v20 }
 0x569   :  { %269 = vst.msk [vmem:[#allocation7 + $0x4] sm:$0x1] %vm100_vm1, %v268_v21  ;;  %452 = vmatmul.msk.f32.vlgmr.msrb.gmra.mxu1 %vm59_vm0, %v268_v21 }
 0x5e6   :  { %v291_v23 = vpop.f32.mrf.mxu1 }
 0x5e7   :  { %v294_v24 = vadd.f32 %v291_v23, %v270_v22 }
 0x5e9   :  { %v295_v25 = vmul.f32 0.5, %v294_v24  ;;  %495 = vtanh.f32 %v294_v24 }
 0x5eb   :  { %497 = vtanh.f32 %v295_v25 }
 0x5ef   :  { %v496_v26 = vpop.eup %495 }
 0x5f0   :  { %302 = vrot.lane.b32.xlu1 %v496_v26, %s647_s10 }
 0x5f1   :  { %v498_v27 = vpop.eup %497 }
 0x5f2   :  { %v297_v28 = vmul.f32 0.5, %v498_v27 }
 0x5f4   :  { %v298_v29 = vadd.f32 0.5, %v297_v28 }
 0x5f6   :  { %304 = vrot.lane.b32.xlu2 %v298_v29, %s645_s2  ;;  %300 = vrot.lane.b32.xlu0 %v298_v29, %s646_s9 }
 0x650   :  { %v305_v36 = vpop.permute.xlu2 %304 }
 0x662   :  { %v303_v30 = vpop.permute.xlu1 %302 }
 0x663   :  { %v307_v32 = vmul.f32 %v303_v30, %v298_v29 }
 0x668   :  { %v301_v31 = vpop.permute.xlu0 %300 }
 0x669   :  { %v306_v33 = vmul.f32 %v301_v31, %v266_v18 }
 0x66b   :  { %v308_v34 = vadd.f32 %v307_v32, %v306_v33 }
 0x66d   :  { %499 = vtanh.f32 %v308_v34 }
 0x673   :  { %v500_v35 = vpop.eup %499 }
 0x674   :  { %v310_v37 = vmul.f32 %v500_v35, %v305_v36 }
 0x676   :  { %311 = vst.msk [vmem:[#allocation7 + $0x5] sm:$0x1] %vm100_vm1, %v310_v37  ;;  %453 = vmatmul.msk.f32.vlgmr.msrb.gmra.mxu2 %vm59_vm0, %v310_v37 }
 0x6f9   :  { %v333_v39 = vpop.f32.mrf.mxu2 }
 0x6fa   :  { %v336_v40 = vadd.f32 %v333_v39, %v312_v38 }
 0x6fc   :  { %v337_v41 = vmul.f32 0.5, %v336_v40  ;;  %501 = vtanh.f32 %v336_v40 }
 0x6fe   :  { %503 = vtanh.f32 %v337_v41 }
 0x702   :  { %v502_v42 = vpop.eup %501 }
 0x703   :  { %344 = vrot.lane.b32.xlu1 %v502_v42, %s647_s10 }
 0x704   :  { %v504_v43 = vpop.eup %503 }
 0x705   :  { %v339_v44 = vmul.f32 0.5, %v504_v43 }
 0x707   :  { %v340_v45 = vadd.f32 0.5, %v339_v44 }
 0x709   :  { %346 = vrot.lane.b32.xlu2 %v340_v45, %s645_s2  ;;  %342 = vrot.lane.b32.xlu0 %v340_v45, %s646_s9 }
 0x763   :  { %v347_v52 = vpop.permute.xlu2 %346 }
 0x775   :  { %v345_v46 = vpop.permute.xlu1 %344 }
 0x776   :  { %v349_v48 = vmul.f32 %v345_v46, %v340_v45 }
 0x77b   :  { %v343_v47 = vpop.permute.xlu0 %342 }
 0x77c   :  { %v348_v49 = vmul.f32 %v343_v47, %v308_v34 }
 0x77e   :  { %v350_v50 = vadd.f32 %v349_v48, %v348_v49 }
 0x780   :  { %505 = vtanh.f32 %v350_v50 }
 0x786   :  { %v506_v51 = vpop.eup %505 }
 0x787   :  { %v352_v53 = vmul.f32 %v506_v51, %v347_v52 }
 0x789   :  { %353 = vst.msk [vmem:[#allocation7 + $0x6] sm:$0x1] %vm100_vm1, %v352_v53  ;;  %454 = vmatmul.msk.f32.vlgmr.msrb.gmra.mxu3 %vm59_vm0, %v352_v53 }
 0x80c   :  { %v375_v55 = vpop.f32.mrf.mxu3 }
 0x80d   :  { %v378_v56 = vadd.f32 %v375_v55, %v354_v54 }
 0x80f   :  { %v379_v57 = vmul.f32 0.5, %v378_v56  ;;  %507 = vtanh.f32 %v378_v56 }
 0x811   :  { %509 = vtanh.f32 %v379_v57 }
 0x815   :  { %v508_v58 = vpop.eup %507 }
 0x816   :  { %386 = vrot.lane.b32.xlu1 %v508_v58, %s647_s10 }
 0x817   :  { %v510_v59 = vpop.eup %509 }
 0x818   :  { %v381_v60 = vmul.f32 0.5, %v510_v59 }
 0x81a   :  { %v382_v61 = vadd.f32 0.5, %v381_v60 }
 0x81c   :  { %388 = vrot.lane.b32.xlu2 %v382_v61, %s645_s2  ;;  %384 = vrot.lane.b32.xlu0 %v382_v61, %s646_s9 }
 0x876   :  { %v389_v4 = vpop.permute.xlu2 %388 }
 0x888   :  { %v387_v62 = vpop.permute.xlu1 %386 }
 0x889   :  { %v391_v0 = vmul.f32 %v387_v62, %v382_v61 }
 0x88e   :  { %v385_v63 = vpop.permute.xlu0 %384 }
 0x88f   :  { %v390_v1 = vmul.f32 %v385_v63, %v350_v50 }
 0x891   :  { %v392_v2 = vadd.f32 %v391_v0, %v390_v1 }
 0x893   :  { %511 = vtanh.f32 %v392_v2  ;;  %397 = vst.msk [vmem:[#allocation10] sm:$0x1] %vm100_vm1, %v392_v2 }
 0x899   :  { %v512_v3 = vpop.eup %511 }
 0x89a   :  { %v394_v5 = vmul.f32 %v512_v3, %v389_v4 }
 0x89c   :  { %395 = vst.msk [vmem:[#allocation7 + $0x7] sm:$0x1] %vm100_vm1, %v394_v5 }
 0x89d   :  { %396 = vst.msk [vmem:[#allocation8] sm:$0x1] %vm100_vm1, %v394_v5  ;;  %408 = dma.vmem_to_hbm [thread:$0]  %s404_s13, 128, %s406_s16, [#allocation4]  }
 0x89e   :  { %419 = dma.vmem_to_hbm [thread:$0]  %s415_s18, 16, %s417_s21, [#allocation9]  }
 0x89f   :  { %430 = dma.vmem_to_hbm [thread:$0]  %s426_s23, 16, %s428_s26, [#allocation9]  }
 0x8a0   :  { %637 = dma.done.wait [#allocation4], 128  }
 0x8a1   :  { %638 = vsyncadd [#allocation4], 4294967168 }
 0x8a2   :  { %639 = dma.done.wait [#allocation9], 32  }
 0x8a3   :  { %640 = vsyncadd [#allocation9], 4294967264 }
 0x8a4   :  { %443 = vsyncpa [#allocation3], 1 }
 0x8a5   :  { %444 = vsyncpa [#allocation6], 1 }
 0x8a6   :  { %445 = vsyncpa [#allocation4], 1 }
 0x8a7   :  { %446 = vsyncpa [#allocation9], 1 }

</bundles_post_ra>
